<compile_context>
chip_gen: v7x
topology: tpu7x:2x2x1
jax: 0.10.0
libtpu: 0.0.40
codegen_flags: <defaults>
</compile_context>

<pallas_src>
import jax
import jax.numpy as jnp
from jax.experimental import pallas as pl
from jax.experimental.pallas import tpu as pltpu


# ----------------------------------------------------------------------------
# Fused kernel: one batch block (B_BLK samples) per grid step.
#   scal_ref  : SMEM (1,)              f32   (1 + a(t))
#   w_ref     : SMEM (C_lat*C_in,)     f32   1x1-conv encode weights, row-major
#   x_ref     : VMEM (C_in, B_BLK, HW) bf16  image block, channel-major
#   eps_ref   : VMEM (C_lat, HW)       f32   shared noise (pre-widened)
#   condT_ref : VMEM (C_lat, n_p_pad)  f32   cond^T pre-scaled by -2/(C_lat*HW)
#   cnormt_ref: VMEM (1, n_p_pad)      f32   |cond_p|^2 / C_lat (batch-invariant)
#   out_ref   : VMEM (B_BLK, n_p_pad)  f32   per-prompt MSE for the block
# ----------------------------------------------------------------------------
def _softrepa_fused_kernel(scal_ref, w_ref, x_ref, eps_ref, condT_ref,
                           cnormt_ref, out_ref):
    one_plus_a = scal_ref[0]
    c_in, b_blk, hw = x_ref.shape
    c_lat = eps_ref.shape[0]
    n_p_pad = condT_ref.shape[1]
    inv_n = 1.0 / float(c_lat * hw)

    xf = x_ref[...].astype(jnp.float32)        # single bf16->f32 widen per block
    epsf = eps_ref[...]                        # (C_lat, HW) f32, no cast
    condT = condT_ref[...]                     # (C_lat, n_p_pad) f32, pre-scaled

    ssq = jnp.zeros((b_blk, 1), jnp.float32)
    cross = jnp.zeros((b_blk, n_p_pad), jnp.float32)
    for c in range(c_lat):                     # static unroll, C_lat = 4
        # sampler.encode, latent channel c: 1x1 conv as C_in scalar-broadcast
        # FMAs on the VPU over (B_BLK, HW) tiles (batch on sublanes).
        lat_c = w_ref[c * c_in] * xf[0]
        for j in range(1, c_in):               # static unroll, C_in = 4
            lat_c = lat_c + w_ref[c * c_in + j] * xf[j]
        # the sampler returns a half-precision latent -> round through bf16
        lat_c = lat_c.astype(jnp.bfloat16).astype(jnp.float32)
        # SoftREPA velocity error: diff_p = (eps - (1+a)*lat) - cond_p =: base - cond_p
        base_c = epsf[c:c + 1, :] - one_plus_a * lat_c            # (B_BLK, HW)
        ssq = ssq + jnp.sum(base_c * base_c, axis=1, keepdims=True)
        rs_c = jnp.sum(base_c, axis=1, keepdims=True)             # (B_BLK, 1)
        cross = cross + rs_c * condT[c:c + 1, :]                  # (B_BLK, n_p_pad)

    # mean(diff_p^2) = ssq/(C*HW) - 2*<base, cond_p>/(C*HW) + |cond_p|^2/C ;
    # the last two factors are pre-folded into condT / cnormt in the wrapper.
    # Padded prompt columns (cond == 0) hold ssq*inv_n garbage; wrapper slices.
    out_ref[...] = ssq * inv_n + cross + cnormt_ref[...]


def softrepa_forward(one_plus_a, x_cm, w_f32, eps_f32, condT_scaled, cnorm_term):
    """x_cm: (C_in, n_b, HW) bf16; w_f32: (C_lat, C_in) f32; eps_f32: (C_lat, HW)
    f32; condT_scaled: (C_lat, n_p_pad) f32; cnorm_term: (1, n_p_pad) f32.
    Returns (n_b_pad, n_p_pad) f32."""
    c_in, n_b, hw = x_cm.shape
    c_lat = eps_f32.shape[0]
    n_p_pad = condT_scaled.shape[1]

    b_blk = min(n_b, 8)                         # fill the 8-sublane f32 tile
    n_b_pad = pl.cdiv(n_b, b_blk) * b_blk
    if n_b_pad != n_b:
        x_cm = jnp.pad(x_cm, ((0, 0), (0, n_b_pad - n_b), (0, 0)))

    scal = jnp.reshape(one_plus_a, (1,)).astype(jnp.float32)
    w_flat = jnp.reshape(w_f32, (-1,))          # 1-D SMEM (no 8x128 padding)

    return pl.pallas_call(
        _softrepa_fused_kernel,
        out_shape=jax.ShapeDtypeStruct((n_b_pad, n_p_pad), jnp.float32),
        grid=(n_b_pad // b_blk,),
        in_specs=[
            pl.BlockSpec(memory_space=pltpu.MemorySpace.SMEM),         # 1 + a(t)
            pl.BlockSpec(memory_space=pltpu.MemorySpace.SMEM),         # w_enc
            pl.BlockSpec((c_in, b_blk, hw), lambda b: (0, b, 0)),      # image blk
            pl.BlockSpec((c_lat, hw), lambda b: (0, 0)),               # eps
            pl.BlockSpec((c_lat, n_p_pad), lambda b: (0, 0)),          # cond^T
            pl.BlockSpec((1, n_p_pad), lambda b: (0, 0)),              # |cond|^2/C
        ],
        out_specs=pl.BlockSpec((b_blk, n_p_pad), lambda b: (b, 0)),
        compiler_params=pltpu.CompilerParams(
            dimension_semantics=("parallel",)),   # v7x: 2 TCs split batch blocks
    )(scal, w_flat, x_cm, eps_f32, condT_scaled, cnorm_term)


# ----------------------------------------------------------------------------
# SoftREPA module (synthetic deterministic "sampler" parameters).
# ----------------------------------------------------------------------------
class SoftREPAPallas:
    def __init__(self, key, *, c_in=4, c_lat=4, n_tkn=8, n_dim=32, vocab=16,
                 img_hw=16):
        k0, k1, k2, k3 = jax.random.split(key, 4)
        self.c_in, self.c_lat = c_in, c_lat
        self.n_tkn, self.n_dim = n_tkn, n_dim
        self.img_hw = img_hw
        # sampler.encode weights (1x1 conv), output-channel major, half prec
        self.w_enc = (jax.random.normal(k0, (c_lat, c_in), jnp.float32)
                      * 0.3).astype(jnp.bfloat16)
        # sampler.encode_prompt embedding table
        self.emb_table = jax.random.normal(k1, (vocab, n_tkn, n_dim), jnp.float32)
        # text-conditioning projection used inside sampler.error
        self.w_text = jax.random.normal(k2, (n_dim, c_lat), jnp.float32) * 0.1
        # sampler.set_noise(batch_size=1): fixed noise shared across the batch
        self.eps = jax.random.normal(
            k3, (c_lat, img_hw * img_hw), jnp.float32).astype(jnp.bfloat16)
        # mirrors `self.null_embs = sampler.encode_prompt([''])` (unused in fwd)
        self.null_embs = self.encode_prompt(jnp.zeros((1,), jnp.int32))

    def encode_prompt(self, label_ids):
        return self.emb_table[label_ids]                  # (n_p, n_tkn, n_dim)

    def forward(self, image, label_ids, t, use_dc=True):
        del use_dc
        n_b, c_in, h, w = image.shape
        hw = h * w
        # image.half() + one-time channel-major layout prep (C_in, N, HW) on the
        # small bf16 tensor; the kernel then slices per-channel slabs for free.
        x_cm = image.reshape(n_b, c_in, hw).astype(jnp.bfloat16).transpose(1, 0, 2)

        # prompt conditioning (glue): pooled token embeddings -> per-channel bias
        prompt_embs = self.encode_prompt(label_ids)           # (n_p, n_tkn, n_dim)
        cond = jnp.mean(prompt_embs, axis=1) @ self.w_text    # (n_p, C_lat), f32
        n_p = cond.shape[0]
        n_p_pad = pl.cdiv(n_p, 128) * 128                     # lane-dense stores

        inv_n = 1.0 / float(self.c_lat * hw)
        # transposed, pre-scaled conditioning: (C_lat, n_p_pad)
        condT_scaled = jnp.zeros((self.c_lat, n_p_pad), jnp.float32).at[
            :, :n_p].set((-2.0 * inv_n) * cond.T)
        # batch-invariant |cond_p|^2 term hoisted out of the kernel
        cnorm_term = jnp.zeros((1, n_p_pad), jnp.float32).at[:, :n_p].set(
            (jnp.sum(cond * cond, axis=1) / self.c_lat)[None, :])

        # schedule coefficient from timestep t (folded to 1+a once)
        one_plus_a = 1.0 + jnp.cos(jnp.asarray(t, jnp.float32) * 1e-3)

        out = softrepa_forward(one_plus_a, x_cm,
                               self.w_enc.astype(jnp.float32),
                               self.eps.astype(jnp.float32),
                               condT_scaled, cnorm_term)
        return out[:n_b, :n_p]                                # (n_b, n_p)

    # pure-JAX reference with the exact PyTorch ordering/reshape semantics
    def reference(self, image, label_ids, t):
        n_b, c_in, h, w = image.shape
        hw = h * w
        x = image.reshape(n_b, c_in, hw)
        xq = x.astype(jnp.bfloat16).astype(jnp.float32)
        wq = self.w_enc.astype(jnp.float32)
        lat = jnp.zeros((n_b, self.c_lat, hw), jnp.float32)
        for j in range(c_in):
            lat = lat + wq[None, :, j:j + 1] * xq[:, j:j + 1, :]
        lat = lat.astype(jnp.bfloat16).astype(jnp.float32)

        prompt_embs = self.encode_prompt(label_ids)
        cond = jnp.mean(prompt_embs, axis=1) @ self.w_text
        n_p = cond.shape[0]
        a = jnp.cos(jnp.asarray(t, jnp.float32) * 1e-3)
        eps32 = self.eps.astype(jnp.float32)[None]            # (1, C_lat, HW)

        # batch_latent = cat([latent]*n_p), pidxs p-major (PyTorch ordering)
        batch_latent = jnp.concatenate([lat] * n_p, axis=0)   # (n_p*n_b, C, HW)
        batch_cond = jnp.repeat(cond, n_b, axis=0)            # (n_p*n_b, C)
        v = eps32 - batch_latent
        pred_v = a * batch_latent + batch_cond[:, :, None]
        err = jnp.mean((v - pred_v) ** 2, axis=(1, 2))        # (n_p*n_b,)
        return err.reshape(n_p, n_b).T                        # (n_b, n_p)


if __name__ == "__main__":
    key = jax.random.PRNGKey(0)
    kmod, kimg = jax.random.split(key)

    model = SoftREPAPallas(kmod, c_in=4, c_lat=4, n_tkn=8, n_dim=32, img_hw=16)

    # image: (n_b=2, C=4, H=16, W=16) NCHW; label: 3 prompt ids; t: timestep
    image = jax.random.normal(kimg, (2, 4, 16, 16), jnp.float32)
    label_ids = jnp.array([1, 5, 9], dtype=jnp.int32)
    t = jnp.array(500, dtype=jnp.int32)

    out = jax.block_until_ready(model.forward(image, label_ids, t))
    ref = jax.block_until_ready(model.reference(image, label_ids, t))

    assert out.shape == (2, 3), out.shape
    assert jnp.allclose(out, ref, rtol=5e-4, atol=1e-4), (out, ref)

    print("KERNEL_OK")
</pallas_src>

<mosaic_0001>
module attributes {stable_mosaic.version = 11 : i64} {
  func.func @_softrepa_fused_kernel(%arg0: i32, %arg1: memref<1xf32, #tpu.memory_space<smem>>, %arg2: memref<16xf32, #tpu.memory_space<smem>>, %arg3: memref<4x2x256xbf16, #tpu.memory_space<vmem>>, %arg4: memref<4x256xf32, #tpu.memory_space<vmem>>, %arg5: memref<4x128xf32, #tpu.memory_space<vmem>>, %arg6: memref<1x128xf32, #tpu.memory_space<vmem>>, %arg7: memref<2x128xf32, #tpu.memory_space<vmem>>) attributes {dimension_semantics = [#tpu.dimension_semantics<parallel>], iteration_bounds = array<i64: 1>, scalar_prefetch = 0 : i64, scratch_operands = 0 : i64, tpu.core_type = #tpu.core_type<tc>, window_params = [{transform_indices = @transform_0, window_bounds = array<i64: 1>}, {transform_indices = @transform_1, window_bounds = array<i64: 16>}, {transform_indices = @transform_2, window_bounds = array<i64: 4, 2, 256>}, {pipeline_mode = #tpu.pipeline_mode<synchronous>, transform_indices = @transform_3, window_bounds = array<i64: 4, 256>}, {pipeline_mode = #tpu.pipeline_mode<synchronous>, transform_indices = @transform_4, window_bounds = array<i64: 4, 128>}, {pipeline_mode = #tpu.pipeline_mode<synchronous>, transform_indices = @transform_5, window_bounds = array<i64: 1, 128>}, {transform_indices = @transform_6, window_bounds = array<i64: 2, 128>}]} {
    %c0 = arith.constant 0 : index
    %0 = memref.load %arg1[%c0] : memref<1xf32, #tpu.memory_space<smem>>
    %c0_0 = arith.constant 0 : index
    %c0_1 = arith.constant 0 : index
    %c0_2 = arith.constant 0 : index
    %1 = vector.load %arg3[%c0_0, %c0_1, %c0_2] : memref<4x2x256xbf16, #tpu.memory_space<vmem>>, vector<4x2x256xbf16>
    %2 = arith.extf %1 : vector<4x2x256xbf16> to vector<4x2x256xf32>
    %c0_3 = arith.constant 0 : index
    %c0_4 = arith.constant 0 : index
    %3 = vector.load %arg4[%c0_3, %c0_4] : memref<4x256xf32, #tpu.memory_space<vmem>>, vector<4x256xf32>
    %c0_5 = arith.constant 0 : index
    %c0_6 = arith.constant 0 : index
    %4 = vector.load %arg5[%c0_5, %c0_6] : memref<4x128xf32, #tpu.memory_space<vmem>>, vector<4x128xf32>
    %cst = arith.constant 0.000000e+00 : f32
    %5 = vector.broadcast %cst : f32 to vector<2x1xf32>
    %cst_7 = arith.constant 0.000000e+00 : f32
    %6 = vector.broadcast %cst_7 : f32 to vector<2x128xf32>
    %c0_8 = arith.constant 0 : index
    %7 = memref.load %arg2[%c0_8] : memref<16xf32, #tpu.memory_space<smem>>
    %8 = vector.extract_strided_slice %2 {offsets = [0, 0, 0], sizes = [1, 2, 256], strides = [1, 1, 1]} : vector<4x2x256xf32> to vector<1x2x256xf32>
    %9 = vector.shape_cast %8 : vector<1x2x256xf32> to vector<2x256xf32>
    %10 = vector.broadcast %7 : f32 to vector<2x256xf32>
    %11 = arith.mulf %10, %9 : vector<2x256xf32>
    %c1 = arith.constant 1 : index
    %12 = memref.load %arg2[%c1] : memref<16xf32, #tpu.memory_space<smem>>
    %13 = vector.extract_strided_slice %2 {offsets = [1, 0, 0], sizes = [1, 2, 256], strides = [1, 1, 1]} : vector<4x2x256xf32> to vector<1x2x256xf32>
    %14 = vector.shape_cast %13 : vector<1x2x256xf32> to vector<2x256xf32>
    %15 = vector.broadcast %12 : f32 to vector<2x256xf32>
    %16 = arith.mulf %15, %14 : vector<2x256xf32>
    %17 = arith.addf %11, %16 : vector<2x256xf32>
    %c2 = arith.constant 2 : index
    %18 = memref.load %arg2[%c2] : memref<16xf32, #tpu.memory_space<smem>>
    %19 = vector.extract_strided_slice %2 {offsets = [2, 0, 0], sizes = [1, 2, 256], strides = [1, 1, 1]} : vector<4x2x256xf32> to vector<1x2x256xf32>
    %20 = vector.shape_cast %19 : vector<1x2x256xf32> to vector<2x256xf32>
    %21 = vector.broadcast %18 : f32 to vector<2x256xf32>
    %22 = arith.mulf %21, %20 : vector<2x256xf32>
    %23 = arith.addf %17, %22 : vector<2x256xf32>
    %c3 = arith.constant 3 : index
    %24 = memref.load %arg2[%c3] : memref<16xf32, #tpu.memory_space<smem>>
    %25 = vector.extract_strided_slice %2 {offsets = [3, 0, 0], sizes = [1, 2, 256], strides = [1, 1, 1]} : vector<4x2x256xf32> to vector<1x2x256xf32>
    %26 = vector.shape_cast %25 : vector<1x2x256xf32> to vector<2x256xf32>
    %27 = vector.broadcast %24 : f32 to vector<2x256xf32>
    %28 = arith.mulf %27, %26 : vector<2x256xf32>
    %29 = arith.addf %23, %28 : vector<2x256xf32>
    %30 = arith.truncf %29 : vector<2x256xf32> to vector<2x256xbf16>
    %31 = arith.extf %30 : vector<2x256xbf16> to vector<2x256xf32>
    %32 = vector.extract_strided_slice %3 {offsets = [0, 0], sizes = [1, 256], strides = [1, 1]} : vector<4x256xf32> to vector<1x256xf32>
    %33 = vector.broadcast %0 : f32 to vector<2x256xf32>
    %34 = arith.mulf %33, %31 : vector<2x256xf32>
    %35 = vector.broadcast %32 : vector<1x256xf32> to vector<2x256xf32>
    %36 = arith.subf %35, %34 : vector<2x256xf32>
    %37 = arith.mulf %36, %36 : vector<2x256xf32>
    %cst_9 = arith.constant dense<0.000000e+00> : vector<2xf32>
    %38 = vector.multi_reduction <add>, %37, %cst_9 [1] : vector<2x256xf32> to vector<2xf32>
    %39 = vector.shape_cast %38 : vector<2xf32> to vector<2x1xf32>
    %40 = arith.addf %5, %39 : vector<2x1xf32>
    %cst_10 = arith.constant dense<0.000000e+00> : vector<2xf32>
    %41 = vector.multi_reduction <add>, %36, %cst_10 [1] : vector<2x256xf32> to vector<2xf32>
    %42 = vector.shape_cast %41 : vector<2xf32> to vector<2x1xf32>
    %43 = vector.extract_strided_slice %4 {offsets = [0, 0], sizes = [1, 128], strides = [1, 1]} : vector<4x128xf32> to vector<1x128xf32>
    %44 = vector.broadcast %42 : vector<2x1xf32> to vector<2x128xf32>
    %45 = vector.broadcast %43 : vector<1x128xf32> to vector<2x128xf32>
    %46 = arith.mulf %44, %45 : vector<2x128xf32>
    %47 = arith.addf %6, %46 : vector<2x128xf32>
    %c4 = arith.constant 4 : index
    %48 = memref.load %arg2[%c4] : memref<16xf32, #tpu.memory_space<smem>>
    %49 = vector.extract_strided_slice %2 {offsets = [0, 0, 0], sizes = [1, 2, 256], strides = [1, 1, 1]} : vector<4x2x256xf32> to vector<1x2x256xf32>
    %50 = vector.shape_cast %49 : vector<1x2x256xf32> to vector<2x256xf32>
    %51 = vector.broadcast %48 : f32 to vector<2x256xf32>
    %52 = arith.mulf %51, %50 : vector<2x256xf32>
    %c5 = arith.constant 5 : index
    %53 = memref.load %arg2[%c5] : memref<16xf32, #tpu.memory_space<smem>>
    %54 = vector.extract_strided_slice %2 {offsets = [1, 0, 0], sizes = [1, 2, 256], strides = [1, 1, 1]} : vector<4x2x256xf32> to vector<1x2x256xf32>
    %55 = vector.shape_cast %54 : vector<1x2x256xf32> to vector<2x256xf32>
    %56 = vector.broadcast %53 : f32 to vector<2x256xf32>
    %57 = arith.mulf %56, %55 : vector<2x256xf32>
    %58 = arith.addf %52, %57 : vector<2x256xf32>
    %c6 = arith.constant 6 : index
    %59 = memref.load %arg2[%c6] : memref<16xf32, #tpu.memory_space<smem>>
    %60 = vector.extract_strided_slice %2 {offsets = [2, 0, 0], sizes = [1, 2, 256], strides = [1, 1, 1]} : vector<4x2x256xf32> to vector<1x2x256xf32>
    %61 = vector.shape_cast %60 : vector<1x2x256xf32> to vector<2x256xf32>
    %62 = vector.broadcast %59 : f32 to vector<2x256xf32>
    %63 = arith.mulf %62, %61 : vector<2x256xf32>
    %64 = arith.addf %58, %63 : vector<2x256xf32>
    %c7 = arith.constant 7 : index
    %65 = memref.load %arg2[%c7] : memref<16xf32, #tpu.memory_space<smem>>
    %66 = vector.extract_strided_slice %2 {offsets = [3, 0, 0], sizes = [1, 2, 256], strides = [1, 1, 1]} : vector<4x2x256xf32> to vector<1x2x256xf32>
    %67 = vector.shape_cast %66 : vector<1x2x256xf32> to vector<2x256xf32>
    %68 = vector.broadcast %65 : f32 to vector<2x256xf32>
    %69 = arith.mulf %68, %67 : vector<2x256xf32>
    %70 = arith.addf %64, %69 : vector<2x256xf32>
    %71 = arith.truncf %70 : vector<2x256xf32> to vector<2x256xbf16>
    %72 = arith.extf %71 : vector<2x256xbf16> to vector<2x256xf32>
    %73 = vector.extract_strided_slice %3 {offsets = [1, 0], sizes = [1, 256], strides = [1, 1]} : vector<4x256xf32> to vector<1x256xf32>
    %74 = vector.broadcast %0 : f32 to vector<2x256xf32>
    %75 = arith.mulf %74, %72 : vector<2x256xf32>
    %76 = vector.broadcast %73 : vector<1x256xf32> to vector<2x256xf32>
    %77 = arith.subf %76, %75 : vector<2x256xf32>
    %78 = arith.mulf %77, %77 : vector<2x256xf32>
    %cst_11 = arith.constant dense<0.000000e+00> : vector<2xf32>
    %79 = vector.multi_reduction <add>, %78, %cst_11 [1] : vector<2x256xf32> to vector<2xf32>
    %80 = vector.shape_cast %79 : vector<2xf32> to vector<2x1xf32>
    %81 = arith.addf %40, %80 : vector<2x1xf32>
    %cst_12 = arith.constant dense<0.000000e+00> : vector<2xf32>
    %82 = vector.multi_reduction <add>, %77, %cst_12 [1] : vector<2x256xf32> to vector<2xf32>
    %83 = vector.shape_cast %82 : vector<2xf32> to vector<2x1xf32>
    %84 = vector.extract_strided_slice %4 {offsets = [1, 0], sizes = [1, 128], strides = [1, 1]} : vector<4x128xf32> to vector<1x128xf32>
    %85 = vector.broadcast %83 : vector<2x1xf32> to vector<2x128xf32>
    %86 = vector.broadcast %84 : vector<1x128xf32> to vector<2x128xf32>
    %87 = arith.mulf %85, %86 : vector<2x128xf32>
    %88 = arith.addf %47, %87 : vector<2x128xf32>
    %c8 = arith.constant 8 : index
    %89 = memref.load %arg2[%c8] : memref<16xf32, #tpu.memory_space<smem>>
    %90 = vector.extract_strided_slice %2 {offsets = [0, 0, 0], sizes = [1, 2, 256], strides = [1, 1, 1]} : vector<4x2x256xf32> to vector<1x2x256xf32>
    %91 = vector.shape_cast %90 : vector<1x2x256xf32> to vector<2x256xf32>
    %92 = vector.broadcast %89 : f32 to vector<2x256xf32>
    %93 = arith.mulf %92, %91 : vector<2x256xf32>
    %c9 = arith.constant 9 : index
    %94 = memref.load %arg2[%c9] : memref<16xf32, #tpu.memory_space<smem>>
    %95 = vector.extract_strided_slice %2 {offsets = [1, 0, 0], sizes = [1, 2, 256], strides = [1, 1, 1]} : vector<4x2x256xf32> to vector<1x2x256xf32>
    %96 = vector.shape_cast %95 : vector<1x2x256xf32> to vector<2x256xf32>
    %97 = vector.broadcast %94 : f32 to vector<2x256xf32>
    %98 = arith.mulf %97, %96 : vector<2x256xf32>
    %99 = arith.addf %93, %98 : vector<2x256xf32>
    %c10 = arith.constant 10 : index
    %100 = memref.load %arg2[%c10] : memref<16xf32, #tpu.memory_space<smem>>
    %101 = vector.extract_strided_slice %2 {offsets = [2, 0, 0], sizes = [1, 2, 256], strides = [1, 1, 1]} : vector<4x2x256xf32> to vector<1x2x256xf32>
    %102 = vector.shape_cast %101 : vector<1x2x256xf32> to vector<2x256xf32>
    %103 = vector.broadcast %100 : f32 to vector<2x256xf32>
    %104 = arith.mulf %103, %102 : vector<2x256xf32>
    %105 = arith.addf %99, %104 : vector<2x256xf32>
    %c11 = arith.constant 11 : index
    %106 = memref.load %arg2[%c11] : memref<16xf32, #tpu.memory_space<smem>>
    %107 = vector.extract_strided_slice %2 {offsets = [3, 0, 0], sizes = [1, 2, 256], strides = [1, 1, 1]} : vector<4x2x256xf32> to vector<1x2x256xf32>
    %108 = vector.shape_cast %107 : vector<1x2x256xf32> to vector<2x256xf32>
    %109 = vector.broadcast %106 : f32 to vector<2x256xf32>
    %110 = arith.mulf %109, %108 : vector<2x256xf32>
    %111 = arith.addf %105, %110 : vector<2x256xf32>
    %112 = arith.truncf %111 : vector<2x256xf32> to vector<2x256xbf16>
    %113 = arith.extf %112 : vector<2x256xbf16> to vector<2x256xf32>
    %114 = vector.extract_strided_slice %3 {offsets = [2, 0], sizes = [1, 256], strides = [1, 1]} : vector<4x256xf32> to vector<1x256xf32>
    %115 = vector.broadcast %0 : f32 to vector<2x256xf32>
    %116 = arith.mulf %115, %113 : vector<2x256xf32>
    %117 = vector.broadcast %114 : vector<1x256xf32> to vector<2x256xf32>
    %118 = arith.subf %117, %116 : vector<2x256xf32>
    %119 = arith.mulf %118, %118 : vector<2x256xf32>
    %cst_13 = arith.constant dense<0.000000e+00> : vector<2xf32>
    %120 = vector.multi_reduction <add>, %119, %cst_13 [1] : vector<2x256xf32> to vector<2xf32>
    %121 = vector.shape_cast %120 : vector<2xf32> to vector<2x1xf32>
    %122 = arith.addf %81, %121 : vector<2x1xf32>
    %cst_14 = arith.constant dense<0.000000e+00> : vector<2xf32>
    %123 = vector.multi_reduction <add>, %118, %cst_14 [1] : vector<2x256xf32> to vector<2xf32>
    %124 = vector.shape_cast %123 : vector<2xf32> to vector<2x1xf32>
    %125 = vector.extract_strided_slice %4 {offsets = [2, 0], sizes = [1, 128], strides = [1, 1]} : vector<4x128xf32> to vector<1x128xf32>
    %126 = vector.broadcast %124 : vector<2x1xf32> to vector<2x128xf32>
    %127 = vector.broadcast %125 : vector<1x128xf32> to vector<2x128xf32>
    %128 = arith.mulf %126, %127 : vector<2x128xf32>
    %129 = arith.addf %88, %128 : vector<2x128xf32>
    %c12 = arith.constant 12 : index
    %130 = memref.load %arg2[%c12] : memref<16xf32, #tpu.memory_space<smem>>
    %131 = vector.extract_strided_slice %2 {offsets = [0, 0, 0], sizes = [1, 2, 256], strides = [1, 1, 1]} : vector<4x2x256xf32> to vector<1x2x256xf32>
    %132 = vector.shape_cast %131 : vector<1x2x256xf32> to vector<2x256xf32>
    %133 = vector.broadcast %130 : f32 to vector<2x256xf32>
    %134 = arith.mulf %133, %132 : vector<2x256xf32>
    %c13 = arith.constant 13 : index
    %135 = memref.load %arg2[%c13] : memref<16xf32, #tpu.memory_space<smem>>
    %136 = vector.extract_strided_slice %2 {offsets = [1, 0, 0], sizes = [1, 2, 256], strides = [1, 1, 1]} : vector<4x2x256xf32> to vector<1x2x256xf32>
    %137 = vector.shape_cast %136 : vector<1x2x256xf32> to vector<2x256xf32>
    %138 = vector.broadcast %135 : f32 to vector<2x256xf32>
    %139 = arith.mulf %138, %137 : vector<2x256xf32>
    %140 = arith.addf %134, %139 : vector<2x256xf32>
    %c14 = arith.constant 14 : index
    %141 = memref.load %arg2[%c14] : memref<16xf32, #tpu.memory_space<smem>>
    %142 = vector.extract_strided_slice %2 {offsets = [2, 0, 0], sizes = [1, 2, 256], strides = [1, 1, 1]} : vector<4x2x256xf32> to vector<1x2x256xf32>
    %143 = vector.shape_cast %142 : vector<1x2x256xf32> to vector<2x256xf32>
    %144 = vector.broadcast %141 : f32 to vector<2x256xf32>
    %145 = arith.mulf %144, %143 : vector<2x256xf32>
    %146 = arith.addf %140, %145 : vector<2x256xf32>
    %c15 = arith.constant 15 : index
    %147 = memref.load %arg2[%c15] : memref<16xf32, #tpu.memory_space<smem>>
    %148 = vector.extract_strided_slice %2 {offsets = [3, 0, 0], sizes = [1, 2, 256], strides = [1, 1, 1]} : vector<4x2x256xf32> to vector<1x2x256xf32>
    %149 = vector.shape_cast %148 : vector<1x2x256xf32> to vector<2x256xf32>
    %150 = vector.broadcast %147 : f32 to vector<2x256xf32>
    %151 = arith.mulf %150, %149 : vector<2x256xf32>
    %152 = arith.addf %146, %151 : vector<2x256xf32>
    %153 = arith.truncf %152 : vector<2x256xf32> to vector<2x256xbf16>
    %154 = arith.extf %153 : vector<2x256xbf16> to vector<2x256xf32>
    %155 = vector.extract_strided_slice %3 {offsets = [3, 0], sizes = [1, 256], strides = [1, 1]} : vector<4x256xf32> to vector<1x256xf32>
    %156 = vector.broadcast %0 : f32 to vector<2x256xf32>
    %157 = arith.mulf %156, %154 : vector<2x256xf32>
    %158 = vector.broadcast %155 : vector<1x256xf32> to vector<2x256xf32>
    %159 = arith.subf %158, %157 : vector<2x256xf32>
    %160 = arith.mulf %159, %159 : vector<2x256xf32>
    %cst_15 = arith.constant dense<0.000000e+00> : vector<2xf32>
    %161 = vector.multi_reduction <add>, %160, %cst_15 [1] : vector<2x256xf32> to vector<2xf32>
    %162 = vector.shape_cast %161 : vector<2xf32> to vector<2x1xf32>
    %163 = arith.addf %122, %162 : vector<2x1xf32>
    %cst_16 = arith.constant dense<0.000000e+00> : vector<2xf32>
    %164 = vector.multi_reduction <add>, %159, %cst_16 [1] : vector<2x256xf32> to vector<2xf32>
    %165 = vector.shape_cast %164 : vector<2xf32> to vector<2x1xf32>
    %166 = vector.extract_strided_slice %4 {offsets = [3, 0], sizes = [1, 128], strides = [1, 1]} : vector<4x128xf32> to vector<1x128xf32>
    %167 = vector.broadcast %165 : vector<2x1xf32> to vector<2x128xf32>
    %168 = vector.broadcast %166 : vector<1x128xf32> to vector<2x128xf32>
    %169 = arith.mulf %167, %168 : vector<2x128xf32>
    %170 = arith.addf %129, %169 : vector<2x128xf32>
    %cst_17 = arith.constant 9.765625E-4 : f32
    %171 = vector.broadcast %cst_17 : f32 to vector<2x1xf32>
    %172 = arith.mulf %163, %171 : vector<2x1xf32>
    %173 = vector.broadcast %172 : vector<2x1xf32> to vector<2x128xf32>
    %174 = arith.addf %173, %170 : vector<2x128xf32>
    %c0_18 = arith.constant 0 : index
    %c0_19 = arith.constant 0 : index
    %175 = vector.load %arg6[%c0_18, %c0_19] : memref<1x128xf32, #tpu.memory_space<vmem>>, vector<1x128xf32>
    %176 = vector.broadcast %175 : vector<1x128xf32> to vector<2x128xf32>
    %177 = arith.addf %174, %176 : vector<2x128xf32>
    %c0_20 = arith.constant 0 : index
    %c0_21 = arith.constant 0 : index
    %178 = vector.load %arg7[%c0_20, %c0_21] : memref<2x128xf32, #tpu.memory_space<vmem>>, vector<2x128xf32>
    tpu.vector_store %arg7[%c0_20, %c0_21], %177 {strides = array<i32>} : memref<2x128xf32, #tpu.memory_space<vmem>>, vector<2x128xf32>,
    return
  }
  func.func @transform_0(%arg0: i32) -> i32 {
    %c0_i32 = arith.constant 0 : i32
    %c0_i32_0 = arith.constant 0 : i32
    return %c0_i32 : i32
  }
  func.func @transform_1(%arg0: i32) -> i32 {
    %c0_i32 = arith.constant 0 : i32
    %c0_i32_0 = arith.constant 0 : i32
    return %c0_i32 : i32
  }
  func.func @transform_2(%arg0: i32) -> (i32, i32, i32) {
    %c0_i32 = arith.constant 0 : i32
    %c0_i32_0 = arith.constant 0 : i32
    %c0_i32_1 = arith.constant 0 : i32
    return %c0_i32, %arg0, %c0_i32_0 : i32, i32, i32
  }
  func.func @transform_3(%arg0: i32) -> (i32, i32) {
    %c0_i32 = arith.constant 0 : i32
    %c0_i32_0 = arith.constant 0 : i32
    %c0_i32_1 = arith.constant 0 : i32
    return %c0_i32, %c0_i32_0 : i32, i32
  }
  func.func @transform_4(%arg0: i32) -> (i32, i32) {
    %c0_i32 = arith.constant 0 : i32
    %c0_i32_0 = arith.constant 0 : i32
    %c0_i32_1 = arith.constant 0 : i32
    return %c0_i32, %c0_i32_0 : i32, i32
  }
  func.func @transform_5(%arg0: i32) -> (i32, i32) {
    %c0_i32 = arith.constant 0 : i32
    %c0_i32_0 = arith.constant 0 : i32
    %c0_i32_1 = arith.constant 0 : i32
    return %c0_i32, %c0_i32_0 : i32, i32
  }
  func.func @transform_6(%arg0: i32) -> (i32, i32) {
    %c0_i32 = arith.constant 0 : i32
    %c0_i32_0 = arith.constant 0 : i32
    return %arg0, %c0_i32 : i32, i32
  }
}

</mosaic_0001>

<bundles_post_ra>
// kernel: tpu_custom_call.1
= control target key start
LH: loop header
LB: loop body
LE: loop exit
PB: predicated region body
PF: predicated region fallthrough
CT: control target
= control target key end

     0   :  { %12 = vsyncpa [#allocation6], 0  ;;  %s690_s0 = inlined_call_operand.<no memory space> [shape: f32[1], index: 0, kind: input, shape index: {}]   ;;  %s691_s1 = inlined_call_operand.vmem [shape: f32[16], index: 1, kind: input, shape index: {}]   ;;  %s692_s2 = inlined_call_operand.hbm [shape: bf16[4,2,256], index: 2, kind: input, shape index: {}]   ;;  %s693_s3 = inlined_call_operand.vmem [shape: f32[4,256], index: 3, kind: input, shape index: {}]   ;;  %s694_s4 = inlined_call_operand.vmem [shape: f32[4,128], index: 4, kind: input, shape index: {}]   ;;  %s695_s5 = inlined_call_operand.vmem [shape: f32[1,128], index: 5, kind: input, shape index: {}]   ;;  %s696_s6 = inlined_call_operand.hbm [shape: f32[2,128], index: 6, kind: output, shape index: {}]  }
   0x1   :  { %13 = vsyncpa [#allocation4], 0 }
   0x2   :  { %14 = vsyncpa [#allocation5], 0  ;;  %s23_s23 = sshll.u32 %s691_s1, 4  ;;  %s24_s23 = int_to_ptr.vmem [resolvable:$true] %s23_s23 }
   0x3   :  { %s399_s24 = scalar_lea.vmem %s24_s23, 16  ;;  %p404_p1 = scmp.lt.s32.totalorder %s24_s23, %s24_s23 }
   0x4   :  { %p400_p0 = scmp.ne.s32.totalorder %s24_s23, %s399_s24  ;;  %p405_p2 = scmp.lt.s32.totalorder %s399_s24, %s399_s24 }
   0x6   :  { %p406_p3 = por %p405_p2, %p404_p1 }
   0x8   :  { %p407_p4 = pnand %p406_p3, %p400_p0 }
   0xa   :  { %410 = shalt.err (!%p407_p4)
}
   0xb   :  { %s461_s25 = smov [#allocation3]   ;;  %s462_s26 = smov [#allocation7]  }
   0xc   :  { %26 = dma.vmem_to_smem %s24_s23, 16, %s461_s25, [#allocation6]  }
   0xd   :  { %s32_s27 = sshll.u32 %s462_s26, 4  ;;  %s411_s30 = scalar_lea.hbm %s692_s2, 128  ;;  %s33_s27 = int_to_ptr.vmem [resolvable:$true] %s32_s27 }
   0xe   :  { %p412_p5 = scmp.ne.s32.totalorder %s692_s2, %s411_s30  ;;  %p415_p6 = scmp.lt.u32.totalorder %s411_s30, %s692_s2 }
  0x10   :  { %p417_p7 = pnand %p415_p6, %p412_p5 }
  0x12   :  { %420 = shalt.err (!%p417_p7)
}
  0x13   :  { %s421_s10 = scalar_lea.vmem %s33_s27, 128  ;;  %p426_p9 = scmp.lt.s32.totalorder %s33_s27, %s33_s27 }
  0x14   :  { %p422_p8 = scmp.ne.s32.totalorder %s33_s27, %s421_s10  ;;  %p427_p10 = scmp.lt.s32.totalorder %s421_s10, %s421_s10 }
  0x16   :  { %p428_p11 = por %p427_p10, %p426_p9 }
  0x18   :  { %p429_p12 = pnand %p428_p11, %p422_p8 }
  0x1a   :  { %432 = shalt.err (!%p429_p12)
}
  0x1b   :  { %s463_s11 = smov 32   ;;  %s464_s12 = smov 2  }
  0x1c   :  { %38 = dma.hbm_to_vmem [thread:$0]  %s692_s2, 128, %s33_s27, [#allocation4], %s463_s11, %s463_s11, %s464_s12  }
  0x1d   :  { %455 = dma.done.wait [#allocation6], 16  }
  0x1e   :  { %456 = vsyncadd [#allocation6], 4294967280 }
  0x1f   :  { %457 = dma.done.wait [#allocation4], 128  }
  0x20   :  { %458 = vsyncadd [#allocation4], 4294967168 }
  0x21   :  { %51 = sfence }
  0x22   :  { %v53_v0 = vld [vmem:[#allocation7] sm:$0x3]  ;;  %v54_v1 = vld [vmem:[#allocation7 + $0x2] sm:$0x3]  ;;  %v82_v2 = vlaneseq  ;;  %v55_v3 = vld [vmem:[#allocation7 + $0x4] sm:$0x3]  ;;  %v556_v17 = vstv %s690_s0 }
  0x23   :  { %v56_v4 = vld [vmem:[#allocation7 + $0x6] sm:$0x3]  ;;  %v465_v5 = vmov 1983009808   ;;  %s519_s15 = sld [smem:[#allocation3 + $0x4]]  ;;  %s521_s16 = sld [smem:[#allocation3 + $0x5]]  ;;  %v57_v12 = vunpack.c.l.bf16 %v53_v0  ;;  %v540_v13 = vunpack.c.l.bf16 %v54_v1  ;;  %v549_v15 = vunpack.c.l.bf16 %v55_v3 }
  0x24   :  { %v80_v6 = vunpack.c.l.s4 %v465_v5  ;;  %v517_v7 = vshrl.u32 %v82_v2, 7  ;;  %v526_v8 = vld [vmem:[%s693_s3] sm:$0xff]  ;;  %s528_s18 = sld [smem:[#allocation3 + $0x6]]  ;;  %s530_s19 = sld [smem:[#allocation3 + $0x7]]  ;;  %v551_v16 = vunpack.c.l.bf16 %v56_v4  ;;  %vm119_vm0 = vcmask 1041408  }
  0x25   :  { %s536_s20 = sld [smem:[#allocation3]]  ;;  %s538_s21 = sld [smem:[#allocation3 + $0x1]] }
  0x26   :  { %v81_v9 = vunpack.c.0.s8 %v80_v6  ;;  %v533_v10 = vsub.s32 1, %v517_v7  ;;  %v175_v11 = vsub.s32 5, %v517_v7  ;;  %s542_s3 = sld [smem:[#allocation3 + $0x2]]  ;;  %s544_s22 = sld [smem:[#allocation3 + $0x3]]  ;;  %v547_v14 = vsub.s32 0, %v517_v7 }
  0x27   :  { %s558_s25 = sld [smem:[#allocation3 + $0x8]]  ;;  %s560_s26 = sld [smem:[#allocation3 + $0x9]]  ;;  %v103_v21 = vsub.s32 4, %v517_v7  ;;  %v580_v25 = vsub.s32 2, %v517_v7  ;;  %v246_v41 = vsub.s32 6, %v517_v7  ;;  %v617_v57 = vsub.s32 3, %v517_v7 }
  0x28   :  { %v563_v18 = vsub.s32 %v81_v9, %v517_v7  ;;  %v172_v19 = vrot.slane %v526_v8, %v533_v10  ;;  %v568_v20 = vrot.slane %v526_v8, %v175_v11  ;;  %s571_s0 = sld [smem:[#allocation3 + $0xa]]  ;;  %s573_s27 = sld [smem:[#allocation3 + $0xb]]  ;;  %v100_v24 = vrot.slane %v526_v8, %v547_v14 }
  0x29   :  { %v138_v22 = vstv %s519_s15  ;;  %v141_v23 = vstv %s521_s16  ;;  %s582_s28 = sld [smem:[#allocation3 + $0xc]]  ;;  %s591_s29 = sld [smem:[#allocation3 + $0xd]]  ;;  %v600_v40 = vrot.slane %v526_v8, %v103_v21  ;;  %v243_v6 = vrot.slane %v526_v8, %v580_v25 }
  0x2a   :  { %v139_v26 = vmul.f32 %v138_v22, %v57_v12  ;;  %v142_v27 = vmul.f32 %v141_v23, %v540_v13  ;;  %v145_v28 = vstv %s528_s18  ;;  %v149_v29 = vstv %s530_s19  ;;  %s593_s30 = sld [smem:[#allocation3 + $0xe]]  ;;  %s603_s7 = sld [smem:[#allocation3 + $0xf]] }
  0x2b   :  { %v146_v30 = vmul.f32 %v145_v28, %v549_v15  ;;  %v150_v31 = vmul.f32 %v149_v29, %v551_v16  ;;  %v64_v32 = vstv %s536_s20  ;;  %v67_v33 = vstv %s538_s21  ;;  %s466_s10 = smov [#allocation8]  }
  0x2c   :  { %v143_v34 = vadd.f32 %v142_v27, %v139_v26  ;;  %v65_v35 = vmul.f32 %v64_v32, %v57_v12  ;;  %v68_v36 = vmul.f32 %v67_v33, %v540_v13  ;;  %v71_v37 = vstv %s542_s3  ;;  %s367_s11 = sshll.u32 %s466_s10, 4  ;;  %s368_s11 = int_to_ptr.vmem [resolvable:$true] %s367_s11 }
  0x2d   :  { %v72_v38 = vmul.f32 %v71_v37, %v549_v15  ;;  %v75_v39 = vstv %s544_s22  ;;  %v209_v45 = vstv %s558_s25  ;;  %v212_v47 = vstv %s560_s26  ;;  %s433_s12 = scalar_lea.vmem %s368_s11, 32  ;;  %p438_p0 = scmp.lt.s32.totalorder %s368_s11, %s368_s11 }
  0x2e   :  { %v147_v42 = vadd.f32 %v146_v30, %v143_v34  ;;  %v69_v43 = vadd.f32 %v68_v36, %v65_v35  ;;  %v76_v44 = vmul.f32 %v75_v39, %v551_v16  ;;  %v210_v46 = vmul.f32 %v209_v45, %v57_v12  ;;  %p434_p13 = scmp.ne.s32.totalorder %s368_s11, %s433_s12  ;;  %p439_p1 = scmp.lt.s32.totalorder %s433_s12, %s433_s12 }
  0x2f   :  { %v216_v48 = vstv %s571_s0  ;;  %v220_v49 = vstv %s573_s27  ;;  %v213_v52 = vmul.f32 %v212_v47, %v540_v13  ;;  %v182_v54 = vrot.slane %v172_v19, %v533_v10 }
  0x30   :  { %v151_v50 = vadd.f32 %v150_v31, %v147_v42  ;;  %v73_v51 = vadd.f32 %v72_v38, %v69_v43  ;;  %v217_v53 = vmul.f32 %v216_v48, %v549_v15  ;;  %v186_v55 = vrot.slane %v568_v20, %v533_v10  ;;  %p440_p2 = por %p439_p1, %p438_p0 }
  0x31   :  { %v280_v56 = vstv %s582_s28  ;;  %v110_v60 = vrot.slane %v100_v24, %v547_v14  ;;  %v214_v61 = vadd.f32 %v213_v52, %v210_v46  ;;  %v221_v62 = vmul.f32 %v220_v49, %v551_v16 }
  0x32   :  { %v159_v58 = vrot.slane %v151_v50, %v563_v18  ;;  %v77_v59 = vadd.f32 %v76_v44, %v73_v51  ;;  %v281_v63 = vmul.f32 %v280_v56, %v57_v12  ;;  %v283_v0 = vstv %s591_s29  ;;  %p441_p3 = pnand %p440_p2, %p434_p13 }
  0x33   :  { %v287_v1 = vstv %s593_s30  ;;  %v218_v5 = vadd.f32 %v217_v53, %v214_v61  ;;  %v284_v9 = vmul.f32 %v283_v0, %v540_v13  ;;  %v291_v19 = vstv %s603_s7 }
  0x34   :  { %v160_v2 = vcombine.high %v159_v58, %v159_v58  ;;  %v163_v3 = vpack.c.bf16 %v159_v58, %v159_v58  ;;  %v85_v4 = vrot.slane %v77_v59, %v563_v18  ;;  %v288_v11 = vmul.f32 %v287_v1, %v549_v15 }
  0x35   :  { %v222_v12 = vadd.f32 %v221_v62, %v218_v5  ;;  %v247_v24 = vrot.slane %v526_v8, %v246_v41  ;;  %v285_v26 = vadd.f32 %v284_v9, %v281_v63  ;;  %v292_v27 = vmul.f32 %v291_v19, %v551_v16 }
  0x36   :  { %v164_v20 = vpack.c.bf16 %v160_v2, %v160_v2  ;;  %v165_v21 = vunpack.c.l.bf16 %v163_v3  ;;  %v86_v22 = vcombine.high %v85_v4, %v85_v4  ;;  %v89_v23 = vpack.c.bf16 %v85_v4, %v85_v4 }
  0x37   :  { %v114_v13 = vrot.slane %v600_v40, %v547_v14  ;;  %v230_v15 = vrot.slane %v222_v12, %v563_v18  ;;  %v253_v32 = vrot.slane %v243_v6, %v580_v25  ;;  %v289_v33 = vadd.f32 %v288_v11, %v285_v26 }
  0x38   :  { %v166_v28 = vunpack.c.l.bf16 %v164_v20  ;;  %v167_v29 = vmul.f32 %v165_v21, %v556_v17  ;;  %v90_v30 = vpack.c.bf16 %v86_v22, %v86_v22  ;;  %v91_v31 = vunpack.c.l.bf16 %v89_v23 }
  0x39   :  { %v231_v16 = vcombine.high %v230_v15, %v230_v15  ;;  %v234_v38 = vpack.c.bf16 %v230_v15, %v230_v15  ;;  %v257_v39 = vrot.slane %v247_v24, %v580_v25  ;;  %v293_v41 = vadd.f32 %v292_v27, %v289_v33 }
  0x3a   :  { %v168_v34 = vmul.f32 %v166_v28, %v556_v17  ;;  %v187_v35 = vsub.f32 %v182_v54, %v167_v29  ;;  %v92_v36 = vunpack.c.l.bf16 %v90_v30  ;;  %v94_v37 = vmul.f32 %v556_v17, %v91_v31 }
  0x3b   :  { %v235_v45 = vpack.c.bf16 %v231_v16, %v231_v16  ;;  %v236_v46 = vunpack.c.l.bf16 %v234_v38  ;;  %v301_v47 = vrot.slane %v293_v41, %v563_v18  ;;  %v317_v48 = vsub.s32 7, %v517_v7 }
  0x3c   :  { %v188_v42 = vsub.f32 %v186_v55, %v168_v34  ;;  %v197_v43 = vsel %vm119_vm0, %v187_v35, 0.0  ;;  %v95_v40 = vmul.f32 %v556_v17, %v92_v36  ;;  %v115_v44 = vsub.f32 %v110_v60, %v94_v37 }
  0x3d   :  { %v237_v54 = vunpack.c.l.bf16 %v235_v45  ;;  %v238_v55 = vmul.f32 %v236_v46, %v556_v17  ;;  %v314_v56 = vrot.slane %v526_v8, %v617_v57  ;;  %v189_v60 = vmul.f32 %v187_v35, %v187_v35 }
  0x3e   :  { %v198_v49 = vsel %vm119_vm0, %v188_v42, 0.0  ;;  %v116_v50 = vsub.f32 %v114_v13, %v95_v40  ;;  %v126_v51 = vsel %vm119_vm0, %v115_v44, 0.0  ;;  %v117_v52 = vmul.f32 %v115_v44, %v115_v44 }
  0x3f   :  { %v199_v53 = vadd.f32 %v198_v49, %v197_v43  ;;  %v239_v61 = vmul.f32 %v237_v54, %v556_v17  ;;  %v258_v62 = vsub.f32 %v253_v32, %v238_v55  ;;  %v190_v63 = vmul.f32 %v188_v42, %v188_v42 }
  0x40   :  { %v127_v58 = vsel %vm119_vm0, %v116_v50, 0.0  ;;  %v118_v59 = vmul.f32 %v116_v50, %v116_v50  ;;  %v120_v18 = vsel %vm119_vm0, %v117_v52, 0.0  ;;  %v302_v1 = vcombine.high %v301_v47, %v301_v47 }
  0x41   :  { %200 = vadd.xlane.f32.xlu1 %v199_v53  ;;  %v128_v7 = vadd.f32 %v127_v58, %v126_v51  ;;  %v305_v2 = vpack.c.bf16 %v301_v47, %v301_v47  ;;  %v318_v3 = vrot.slane %v526_v8, %v317_v48  ;;  %v259_v4 = vsub.f32 %v257_v39, %v239_v61 }
  0x42   :  { %v121_v0 = vsel %vm119_vm0, %v118_v59, 0.0  ;;  %v268_v5 = vsel %vm119_vm0, %v258_v62, 0.0  ;;  %v260_v9 = vmul.f32 %v258_v62, %v258_v62  ;;  %v191_v11 = vsel %vm119_vm0, %v189_v60, 0.0 }
  0x43   :  { %129 = vadd.xlane.f32.xlu0 %v128_v7  ;;  %v122_v6 = vadd.f32 %v121_v0, %v120_v18  ;;  %v306_v19 = vpack.c.bf16 %v302_v1, %v302_v1  ;;  %v307_v20 = vunpack.c.l.bf16 %v305_v2  ;;  %v324_v21 = vrot.slane %v314_v56, %v617_v57 }
  0x44   :  { %v269_v22 = vsel %vm119_vm0, %v259_v4, 0.0  ;;  %v192_v23 = vsel %vm119_vm0, %v190_v63, 0.0  ;;  %v261_v12 = vmul.f32 %v259_v4, %v259_v4  ;;  %v262_v24 = vsel %vm119_vm0, %v260_v9, 0.0 }
  0x45   :  { %v270_v8 = vadd.f32 %v269_v22, %v268_v5  ;;  %v308_v26 = vunpack.c.l.bf16 %v306_v19  ;;  %v309_v27 = vmul.f32 %v307_v20, %v556_v17  ;;  %v328_v28 = vrot.slane %v318_v3, %v617_v57 }
  0x46   :  { %v263_v29 = vsel %vm119_vm0, %v261_v12, 0.0  ;;  %v193_v30 = vadd.f32 %v192_v23, %v191_v11 }
  0x47   :  { %123 = vadd.xlane.f32.xlu0 %v122_v6  ;;  %271 = vadd.xlane.f32.xlu1 %v270_v8  ;;  %v264_v31 = vadd.f32 %v263_v29, %v262_v24  ;;  %v310_v13 = vmul.f32 %v308_v26, %v556_v17  ;;  %v329_v15 = vsub.f32 %v324_v21, %v309_v27  ;;  %v62_v17 = vld [vmem:[%s694_s4] sm:$0xf] }
  0x48   :  { %v205_v41 = vrot.slane %v62_v17, %v533_v10  ;;  %v134_v42 = vrot.slane %v62_v17, %v547_v14  ;;  %v276_v46 = vrot.slane %v62_v17, %v580_v25  ;;  %v347_v55 = vrot.slane %v62_v17, %v617_v57  ;;  %v392_v25 = vld [vmem:[%s695_s5] ss:$0 sm:$0xff] }
  0x49   :  { %v330_v32 = vsub.f32 %v328_v28, %v310_v13  ;;  %v339_v33 = vsel %vm119_vm0, %v329_v15, 0.0  ;;  %v331_v34 = vmul.f32 %v329_v15, %v329_v15 }
  0x4b   :  { %265 = vadd.xlane.f32.xlu0 %v264_v31  ;;  %194 = vadd.xlane.f32.xlu1 %v193_v30  ;;  %v340_v35 = vsel %vm119_vm0, %v330_v32, 0.0  ;;  %v332_v36 = vmul.f32 %v330_v32, %v330_v32  ;;  %v333_v37 = vsel %vm119_vm0, %v331_v34, 0.0 }
  0x4c   :  { %v341_v16 = vadd.f32 %v340_v35, %v339_v33 }
  0x4d   :  { %v334_v38 = vsel %vm119_vm0, %v332_v36, 0.0 }
  0x4e   :  { %v335_v39 = vadd.f32 %v334_v38, %v333_v37 }
  0x4f   :  { %342 = vadd.xlane.f32.xlu1 %v341_v16 }
  0x50   :  { %336 = vadd.xlane.f32.xlu0 %v335_v39 }
  0xce   :  { %v201_v43 = vpop.xlane.xlu1 %200 }
  0xcf   :  { %v206_v40 = vmul.f32 %v205_v41, %v201_v43 }
  0xd0   :  { %v130_v44 = vpop.xlane.xlu0 %129 }
  0xd1   :  { %v135_v45 = vmul.f32 %v134_v42, %v130_v44 }
  0xd3   :  { %v207_v47 = vadd.f32 %v206_v40, %v135_v45 }
  0xd4   :  { %v124_v48 = vpop.xlane.xlu0 %123  ;;  %v272_v49 = vpop.xlane.xlu1 %271 }
  0xd5   :  { %v277_v50 = vmul.f32 %v276_v46, %v272_v49 }
  0xd7   :  { %v278_v51 = vadd.f32 %v277_v50, %v207_v47 }
  0xd8   :  { %v266_v52 = vpop.xlane.xlu0 %265  ;;  %v195_v53 = vpop.xlane.xlu1 %194 }
  0xd9   :  { %v196_v54 = vadd.f32 %v195_v53, %v124_v48 }
  0xdb   :  { %v267_v56 = vadd.f32 %v266_v52, %v196_v54 }
  0xdc   :  { %v343_v10 = vpop.xlane.xlu1 %342 }
  0xdd   :  { %v348_v58 = vmul.f32 %v347_v55, %v343_v10  ;;  %v337_v14 = vpop.xlane.xlu0 %336 }
  0xde   :  { %v338_v59 = vadd.f32 %v337_v14, %v267_v56 }
  0xdf   :  { %v349_v18 = vadd.f32 %v348_v58, %v278_v51 }
  0xe0   :  { %v350_v60 = vmul.f32 0.0009765625, %v338_v59 }
  0xe2   :  { %v351_v7 = vadd.f32 %v350_v60, %v349_v18 }
  0xe4   :  { %v359_v61 = vadd.f32 %v392_v25, %v351_v7 }
  0xe6   :  { %360 = vst [vmem:[#allocation8] sm:$0x3] %v359_v61 }
  0xe7   :  { %444 = shalt.err (!%p441_p3)
}
  0xe8   :  { %s445_s15 = scalar_lea.hbm %s696_s6, 32 }
  0xe9   :  { %p446_p4 = scmp.ne.s32.totalorder %s696_s6, %s445_s15  ;;  %p449_p5 = scmp.lt.u32.totalorder %s445_s15, %s696_s6 }
  0xeb   :  { %p451_p6 = pnand %p449_p5, %p446_p4 }
  0xed   :  { %454 = shalt.err (!%p451_p6)
}
  0xee   :  { %370 = dma.vmem_to_hbm [thread:$0]  %s368_s11, 32, %s696_s6, [#allocation5]  }
  0xef   :  { %459 = dma.done.wait [#allocation5], 32  }
  0xf0   :  { %460 = vsyncadd [#allocation5], 4294967264 }
  0xf1   :  { %374 = vsyncpa [#allocation4], 1 }
  0xf2   :  { %375 = vsyncpa [#allocation5], 1 }
  0xf3   :  { %376 = vsyncpa [#allocation6], 1 }

</bundles_post_ra>
